<compile_context>
chip_gen: v7x
topology: tpu7x:2x2x1
jax: 0.10.0
libtpu: 0.0.40
codegen_flags: <defaults>
</compile_context>

<pallas_src>
import math

import jax
import jax.numpy as jnp
from jax.experimental import pallas as pl
from jax.experimental.pallas import tpu as pltpu


def _cdiv(a, b):
    return (a + b - 1) // b


def _round_up(n, m):
    return _cdiv(n, m) * m


def _sinusoidal_kernel(x_ref, tab_ref, out_ref):
    # x_ref:   (1, TB)       f32  timesteps, batch on the lane axis
    # tab_ref: (in_dim, 2)   f32  col 0 = [f_0..f_{h-1}, f_0..f_{h-1}]
    #                             col 1 = [0..0, 1..1]  (cos-row selector)
    # out_ref: (in_dim, TB)  f32  rows [0,h) = sin(t*f), rows [h,2h) = cos(t*f)
    tab = tab_ref[...]
    freq = tab[:, 0:1]            # (in_dim, 1) per-row frequency
    use_cos = tab[:, 1:2] > 0.5   # (in_dim, 1) bool: cos rows
    theta = x_ref[...] * freq     # (in_dim, TB) broadcast: lane row x sublane col
    # Exact sin/cos of the same f32 product the reference uses (no phase-add
    # rounding); both transcendentals are hidden under the store bandwidth.
    out_ref[...] = jnp.where(use_cos, jnp.cos(theta), jnp.sin(theta))


def sinusoidal_pos_emb(x, in_dim=28, tile_lanes=8192):
    """x: (B,) timesteps -> (B, in_dim) float32, matching PyTorch SinusoidalPosEmb."""
    assert x.ndim == 1, "expected a 1-D tensor of timesteps"
    assert in_dim % 2 == 0, "in_dim must be even (sin/cos halves)"
    assert in_dim >= 4, "need half_dim >= 2 (log(10000)/(half_dim-1) div-by-zero)"

    b = x.shape[0]
    half_dim = in_dim // 2

    # Static tables, hoisted out of the kernel (depend only on in_dim).
    scale = math.log(10000.0) / (half_dim - 1)
    freqs = jnp.exp(-scale * jnp.arange(half_dim, dtype=jnp.float32))
    freq_full = jnp.tile(freqs, 2)                                  # (in_dim,)
    is_cos = jnp.concatenate([jnp.zeros((half_dim,), jnp.float32),
                              jnp.ones((half_dim,), jnp.float32)])  # (in_dim,)
    table = jnp.stack([freq_full, is_cos], axis=1)                  # (in_dim, 2)

    # Batch lives on the lane axis, so tiles are multiples of 128 lanes.  Pick
    # the smallest number of >=128-lane tiles whose width is <= tile_lanes:
    # small batches stay a single block, large batches get a grid >= 2 (both
    # v7x TensorCores busy) with minimal padding.
    b128 = _round_up(b, 128)
    num_tiles = max(1, _cdiv(b128, tile_lanes))
    tb = _round_up(_cdiv(b128, num_tiles), 128)
    padded_b = tb * num_tiles

    x_row = x.astype(jnp.float32).reshape(1, b)
    if padded_b != b:
        x_row = jnp.pad(x_row, ((0, 0), (0, padded_b - b)))

    out_t = pl.pallas_call(
        _sinusoidal_kernel,
        out_shape=jax.ShapeDtypeStruct((in_dim, padded_b), jnp.float32),
        grid=(num_tiles,),
        in_specs=[
            pl.BlockSpec((1, tb), lambda i: (0, i)),      # timestep lanes tile
            pl.BlockSpec((in_dim, 2), lambda i: (0, 0)),  # resident freq/flag table
        ],
        out_specs=pl.BlockSpec((in_dim, tb), lambda i: (i and 0, i)[-2:]
                               if False else (0, i)),
        compiler_params=pltpu.CompilerParams(
            dimension_semantics=("parallel",)),
    )(x_row, table)

    # Transpose back to (B, in_dim) to match the PyTorch module.  A downstream
    # Linear could instead consume the lane-dense (in_dim, B) slab directly
    # (contract over the leading axis) and skip this wrapper transpose.
    return out_t[:, :b].T


def _reference(x, in_dim=28):
    half_dim = in_dim // 2
    emb = math.log(10000.0) / (half_dim - 1)
    emb = jnp.exp(jnp.arange(half_dim, dtype=jnp.float32) * -emb)
    emb = x[:, None].astype(jnp.float32) * emb[None, :]
    return jnp.concatenate([jnp.sin(emb), jnp.cos(emb)], axis=-1)


if __name__ == "__main__":
    key = jax.random.PRNGKey(0)
    in_dim = 28

    # Small shapes: 2 (tiny), 13 (non-multiple of 128, exercises pad+slice).
    for batch in (2, 13):
        kx, key = jax.random.split(key)
        x = jax.random.uniform(kx, (batch,), dtype=jnp.float32,
                               minval=0.0, maxval=1000.0)
        out = jax.block_until_ready(sinusoidal_pos_emb(x, in_dim=in_dim))
        ref = _reference(x, in_dim=in_dim)
        assert out.shape == (batch, in_dim), out.shape
        assert jnp.allclose(out, ref, atol=1e-4, rtol=1e-5), "mismatch vs reference"

    # Force a multi-tile grid cheaply (tile_lanes=128) to exercise pipelining.
    kx, key = jax.random.split(key)
    x = jax.random.uniform(kx, (300,), dtype=jnp.float32,
                           minval=0.0, maxval=1000.0)
    out = jax.block_until_ready(sinusoidal_pos_emb(x, in_dim=in_dim, tile_lanes=128))
    ref = _reference(x, in_dim=in_dim)
    assert out.shape == (300, in_dim), out.shape
    assert jnp.allclose(out, ref, atol=1e-4, rtol=1e-5), "mismatch vs reference"

    print("KERNEL_OK")
</pallas_src>

<mosaic_0001>
module attributes {stable_mosaic.version = 11 : i64} {
  func.func @_sinusoidal_kernel(%arg0: i32, %arg1: memref<1x128xf32, #tpu.memory_space<vmem>>, %arg2: memref<28x2xf32, #tpu.memory_space<vmem>>, %arg3: memref<28x128xf32, #tpu.memory_space<vmem>>) attributes {dimension_semantics = [#tpu.dimension_semantics<parallel>], iteration_bounds = array<i64: 1>, scalar_prefetch = 0 : i64, scratch_operands = 0 : i64, tpu.core_type = #tpu.core_type<tc>, window_params = [{transform_indices = @transform_0, window_bounds = array<i64: 1, 128>}, {pipeline_mode = #tpu.pipeline_mode<synchronous>, transform_indices = @transform_1, window_bounds = array<i64: 28, 2>}, {transform_indices = @transform_2, window_bounds = array<i64: 28, 128>}]} {
    %c0 = arith.constant 0 : index
    %c0_0 = arith.constant 0 : index
    %0 = vector.load %arg2[%c0, %c0_0] : memref<28x2xf32, #tpu.memory_space<vmem>>, vector<28x2xf32>
    %1 = vector.extract_strided_slice %0 {offsets = [0, 0], sizes = [28, 1], strides = [1, 1]} : vector<28x2xf32> to vector<28x1xf32>
    %2 = vector.extract_strided_slice %0 {offsets = [0, 1], sizes = [28, 1], strides = [1, 1]} : vector<28x2xf32> to vector<28x1xf32>
    %cst = arith.constant 5.000000e-01 : f32
    %3 = vector.broadcast %cst : f32 to vector<28x1xf32>
    %4 = arith.cmpf ogt, %2, %3 : vector<28x1xf32>
    %c0_1 = arith.constant 0 : index
    %c0_2 = arith.constant 0 : index
    %5 = vector.load %arg1[%c0_1, %c0_2] : memref<1x128xf32, #tpu.memory_space<vmem>>, vector<1x128xf32>
    %6 = vector.broadcast %5 : vector<1x128xf32> to vector<28x128xf32>
    %7 = vector.broadcast %1 : vector<28x1xf32> to vector<28x128xf32>
    %8 = arith.mulf %6, %7 : vector<28x128xf32>
    %9 = math.cos %8 : vector<28x128xf32>
    %10 = math.sin %8 : vector<28x128xf32>
    %11 = vector.shape_cast %4 : vector<28x1xi1> to vector<28x1xi1>
    %12 = vector.broadcast %11 : vector<28x1xi1> to vector<28x128xi1>
    %13 = arith.select %12, %9, %10 : vector<28x128xi1>, vector<28x128xf32>
    %c0_3 = arith.constant 0 : index
    %c0_4 = arith.constant 0 : index
    %14 = vector.load %arg3[%c0_3, %c0_4] : memref<28x128xf32, #tpu.memory_space<vmem>>, vector<28x128xf32>
    tpu.vector_store %arg3[%c0_3, %c0_4], %13 {strides = array<i32>} : memref<28x128xf32, #tpu.memory_space<vmem>>, vector<28x128xf32>,
    return
  }
  func.func @transform_0(%arg0: i32) -> (i32, i32) {
    %c0_i32 = arith.constant 0 : i32
    %c0_i32_0 = arith.constant 0 : i32
    return %c0_i32, %arg0 : i32, i32
  }
  func.func @transform_1(%arg0: i32) -> (i32, i32) {
    %c0_i32 = arith.constant 0 : i32
    %c0_i32_0 = arith.constant 0 : i32
    %c0_i32_1 = arith.constant 0 : i32
    return %c0_i32, %c0_i32_0 : i32, i32
  }
  func.func @transform_2(%arg0: i32) -> (i32, i32) {
    %c0_i32 = arith.constant 0 : i32
    %c0_i32_0 = arith.constant 0 : i32
    return %c0_i32, %arg0 : i32, i32
  }
}

</mosaic_0001>

<bundles_post_ra>
// kernel: tpu_custom_call.1
= control target key start
LH: loop header
LB: loop body
LE: loop exit
PB: predicated region body
PF: predicated region fallthrough
CT: control target
= control target key end

     0   :  { %v1027_v2 = vmov 0   ;;  %s1387_s0 = inlined_call_operand.vmem [shape: f32[1,128], index: 0, kind: input, shape index: {}]   ;;  %s1388_s1 = inlined_call_operand.vmem [shape: f32[28,2], index: 1, kind: input, shape index: {}]   ;;  %s1389_s2 = inlined_call_operand.hbm [shape: f32[28,128], index: 2, kind: output, shape index: {}]  }
   0x1   :  { %v14_v0 = vld [vmem:[%s1388_s1 + $0x10] sm:$0xff]  ;;  %v12_v1 = vld [vmem:[%s1388_s1] sm:$0xff]  ;;  %984 = vset.pattern.permute.xlu1 %v1027_v2  ;;  %983 = vset.pattern.permute.xlu0 %v1027_v2 }
   0x2   :  { %39 = vperm.xlu1 %984, %v14_v0   ;;  %29 = vperm.xlu0 %983, %v12_v1  }
   0x3   :  { %7 = vsyncpa [#allocation3], 0  ;;  %v15_v3 = vld [vmem:[%s1388_s1 + $0x18] sm:$0xf]  ;;  %v13_v4 = vld [vmem:[%s1388_s1 + $0x8] sm:$0xff]  ;;  %vm16_vm0 = vcmp.gt.f32.partialorder %v12_v1, 0.5 }
   0x4   :  { %vm17_vm1 = vcmp.gt.f32.partialorder %v13_v4, 0.5  ;;  %v879_v6 = vsel %vm16_vm0, 1, %v1027_v2  ;;  %vm18_vm2 = vcmp.gt.f32.partialorder %v14_v0, 0.5  ;;  %vm19_vm3 = vcmp.gt.f32.partialorder %v15_v3, 0.5  ;;  %v923_v10 = vld [vmem:[%s1387_s0] ss:$0 sm:$0xff] }
   0x5   :  { %v880_v5 = vsel %vm17_vm1, 1, %v1027_v2  ;;  %v1028_v7 = vmov 1   ;;  %v881_v8 = vsel %vm18_vm2, 1, %v1027_v2  ;;  %v882_v9 = vsel %vm19_vm3, 1, %v1027_v2  ;;  %s1035_s0 = smov [#allocation2]  }
   0x6   :  { %44 = vperm.xlu1 %984, %v15_v3   ;;  %34 = vperm.xlu0 %983, %v13_v4   ;;  %v1029_v49 = vmov 683565275   ;;  %v1030_v51 = vmov 2475754826   ;;  %v1031_v54 = vmov 2131351028  }
   0x7   :  { %v1032_v56 = vmov 2102212464   ;;  %v1033_v58 = vmov 920167782   ;;  %v1034_v1 = vmov 1326507024  }
   0x8   :  { %s912_s1 = sshll.u32 %s1035_s0, 4  ;;  %s913_s1 = int_to_ptr.vmem [resolvable:$true] %s912_s1 }
   0x9   :  { %s1003_s19 = scalar_lea.vmem %s913_s1, 512  ;;  %p1008_p1 = scmp.lt.s32.totalorder %s913_s1, %s913_s1 }
   0xa   :  { %986 = vset.pattern.permute.xlu1 %v1028_v7  ;;  %985 = vset.pattern.permute.xlu0 %v1028_v7  ;;  %p1004_p0 = scmp.ne.s32.totalorder %s913_s1, %s1003_s19  ;;  %p1009_p2 = scmp.lt.s32.totalorder %s1003_s19, %s1003_s19 }
   0xb   :  { %887 = vperm.xlu1 %986, %v880_v5   ;;  %884 = vperm.xlu0 %985, %v879_v6  }
   0xc   :  { %p1010_p3 = por %p1009_p2, %p1008_p1 }
   0xe   :  { %p1011_p4 = pnand %p1010_p3, %p1004_p0 }
   0xf   :  { %890 = vperm.xlu1 %986, %v881_v8   ;;  %893 = vperm.xlu0 %985, %v882_v9  }
  0x81   :  { %v40_v11 = vpop.permute.xlu1 %39  ;;  %v30_v12 = vpop.permute.xlu0 %29 }
  0x82   :  { %v1068_v13 = vmul.f32 %v923_v10, %v40_v11  ;;  %v1070_v14 = vmul.f32 %v923_v10, %v30_v12 }
  0x84   :  { %v257_v15 = vand.u32 2147483647, %v1068_v13  ;;  %v260_v16 = vand.u32 2139095040, %v1068_v13  ;;  %v51_v17 = vand.u32 2147483647, %v1070_v14  ;;  %v54_v18 = vand.u32 2139095040, %v1070_v14 }
  0x85   :  { %v45_v19 = vpop.permute.xlu1 %44  ;;  %v35_v23 = vpop.permute.xlu0 %34 }
  0x86   :  { %v261_v20 = vshrl.u32 %v260_v16, 23  ;;  %v264_v21 = vand.u32 8388607, %v257_v15  ;;  %v1078_v22 = vmul.f32 %v923_v10, %v45_v19  ;;  %v55_v24 = vshrl.u32 %v54_v18, 23 }
  0x87   :  { %v58_v25 = vand.u32 8388607, %v51_v17  ;;  %v1084_v30 = vmul.f32 %v923_v10, %v35_v23 }
  0x88   :  { %v932_v26 = vadd.s32 4294967169, %v261_v20  ;;  %v360_v27 = vand.u32 2147483647, %v1078_v22  ;;  %v924_v28 = vadd.s32 4294967169, %v55_v24  ;;  %v363_v29 = vand.u32 2139095040, %v1078_v22 }
  0x89   :  { %v265_v31 = vor.u32 8388608, %v264_v21  ;;  %v59_v33 = vor.u32 8388608, %v58_v25  ;;  %v154_v39 = vand.u32 2147483647, %v1084_v30 }
  0x8a   :  { %v267_v32 = vadd.s32 1, %v932_v26  ;;  %v61_v34 = vadd.s32 1, %v924_v28  ;;  %v364_v35 = vshrl.u32 %v363_v29, 23  ;;  %v1088_v36 = vand.u32 8388607, %v360_v27 }
  0x8b   :  { %v1091_v42 = vshll.u32 %v265_v31, 8  ;;  %v1095_v46 = vshll.u32 %v59_v33, 8 }
  0x8c   :  { %vm268_vm4 = vcmp.gt.s32.totalorder %v267_v32, 0  ;;  %vm62_vm5 = vcmp.gt.s32.totalorder %v61_v34, 0  ;;  %v936_v38 = vadd.s32 4294967169, %v364_v35  ;;  %v368_v47 = vor.u32 8388608, %v1088_v36 }
  0x8d   :  { %v269_v37 = vsel %vm268_vm4, %v267_v32, 0  ;;  %v63_v43 = vsel %vm62_vm5, %v61_v34, 0 }
  0x8e   :  { %v270_v40 = vshrl.u32 %v269_v37, 5  ;;  %v271_v41 = vand.u32 31, %v269_v37  ;;  %v1093_v44 = vshrl.u32 %v63_v43, 5  ;;  %v65_v45 = vand.u32 31, %v63_v43 }
  0x8f   :  { %v1100_v53 = vadd.s32 1, %v936_v38 }
  0x90   :  { %v272_v48 = vsub.s32 32, %v271_v41  ;;  %v274_v50 = vshll.u32 %v1029_v49, %v271_v41  ;;  %v277_v52 = vshll.u32 %v1030_v51, %v271_v41  ;;  %v280_v55 = vshll.u32 %v1031_v54, %v271_v41 }
  0x91   :  { %v283_v57 = vshll.u32 %v1032_v56, %v271_v41  ;;  %v286_v59 = vshll.u32 %v1033_v58, %v271_v41  ;;  %vm289_vm6 = vcmp.lt.s32.totalorder %v270_v40, 1  ;;  %vm290_vm7 = vcmp.lt.s32.totalorder %v270_v40, 2 }
  0x92   :  { %v275_v60 = vshrl.u32 %v1030_v51, %v272_v48  ;;  %v278_v61 = vshrl.u32 %v1031_v54, %v272_v48  ;;  %v281_v62 = vshrl.u32 %v1032_v56, %v272_v48  ;;  %v273_v63 = vshrl.u32 %v1029_v49, %v272_v48 }
  0x93   :  { %v284_v0 = vshrl.u32 %v1033_v58, %v272_v48  ;;  %v287_v2 = vshrl.u32 %v1034_v1, %v272_v48  ;;  %vm291_vm8 = vcmp.lt.s32.totalorder %v270_v40, 3  ;;  %v66_v6 = vsub.s32 32, %v65_v45 }
  0x94   :  { %v276_v3 = vor.u32 %v275_v60, %v274_v50  ;;  %v279_v4 = vor.u32 %v278_v61, %v277_v52  ;;  %v282_v5 = vor.u32 %v281_v62, %v280_v55  ;;  %vm292_vm9 = vcmp.lt.s32.totalorder %v270_v40, 4 }
  0x95   :  { %v285_v7 = vor.u32 %v284_v0, %v283_v57  ;;  %v288_v8 = vor.u32 %v287_v2, %v286_v59  ;;  %v68_v9 = vshll.u32 %v1029_v49, %v65_v45  ;;  %v71_v21 = vshll.u32 %v1030_v51, %v65_v45 }
  0x96   :  { %v293_v10 = vsel %vm289_vm6, %v273_v63, %v276_v3  ;;  %v294_v11 = vsel %vm292_vm9, %v282_v5, 2102212464  ;;  %v297_v12 = vsel %vm289_vm6, %v276_v3, %v279_v4  ;;  %v301_v16 = vsel %vm289_vm6, %v279_v4, %v282_v5 }
  0x97   :  { %v295_v18 = vsel %vm291_vm8, %v279_v4, %v294_v11  ;;  %v298_v19 = vsel %vm292_vm9, %v285_v7, 920167782  ;;  %v302_v20 = vsel %vm292_vm9, %v288_v8, 1326507024  ;;  %v67_v25 = vshrl.u32 %v1029_v49, %v66_v6 }
  0x98   :  { %v299_v23 = vsel %vm291_vm8, %v282_v5, %v298_v19  ;;  %v303_v24 = vsel %vm291_vm8, %v285_v7, %v302_v20  ;;  %v69_v26 = vshrl.u32 %v1030_v51, %v66_v6  ;;  %v296_v28 = vsel %vm290_vm7, %v293_v10, %v295_v18 }
  0x99   :  { %v300_v29 = vsel %vm290_vm7, %v297_v12, %v299_v23  ;;  %v304_v31 = vsel %vm290_vm7, %v301_v16, %v303_v24  ;;  %v72_v32 = vshrl.u32 %v1031_v54, %v66_v6  ;;  %v74_v43 = vshll.u32 %v1031_v54, %v65_v45 }
  0x9a   :  { %v1126_v33 = vmul.u32.u64.low %v1091_v42, %v304_v31  ;;  %v1127_v34 = vmul.u32.u64.high %v1091_v42, %v304_v31, %v1126_v33  ;;  %v1130_v35 = vmul.u32.u64.low %v1091_v42, %v300_v29  ;;  %v1131_v37 = vmul.u32.u64.high %v1091_v42, %v300_v29, %v1130_v35 }
  0x9b   :  { %v70_v38 = vor.u32 %v69_v26, %v68_v9  ;;  %v73_v41 = vor.u32 %v72_v32, %v71_v21  ;;  %v75_v48 = vshrl.u32 %v1032_v56, %v66_v6  ;;  %v312_v50 = vmul.u32 %v1091_v42, %v296_v28 }
  0x9c   :  { %v77_v40 = vshll.u32 %v1032_v56, %v65_v45  ;;  %v78_v52 = vshrl.u32 %v1033_v58, %v66_v6  ;;  %v81_v55 = vshrl.u32 %v1034_v1, %v66_v6  ;;  %v80_v59 = vshll.u32 %v1033_v58, %v65_v45 }
  0x9d   :  { %v76_v57 = vor.u32 %v75_v48, %v74_v43  ;;  %vm83_vm10 = vcmp.lt.s32.totalorder %v1093_v44, 1  ;;  %vm84_vm11 = vcmp.lt.s32.totalorder %v1093_v44, 2  ;;  %vm314_vm12 = vc.u32 %v1127_v34, %v1130_v35 }
  0x9e   :  { %v315_v60 = vadd.s32 1, %v1131_v37  ;;  %v79_v61 = vor.u32 %v78_v52, %v77_v40  ;;  %vm85_vm13 = vcmp.lt.s32.totalorder %v1093_v44, 3  ;;  %v82_v42 = vor.u32 %v81_v55, %v80_v59 }
  0x9f   :  { %vm86_vm14 = vcmp.lt.s32.totalorder %v1093_v44, 4  ;;  %v87_v62 = vsel %vm83_vm10, %v67_v25, %v70_v38  ;;  %v91_v63 = vsel %vm83_vm10, %v70_v38, %v73_v41  ;;  %v95_v3 = vsel %vm83_vm10, %v73_v41, %v76_v57 }
  0xa0   :  { %v316_v0 = vsel %vm314_vm12, %v315_v60, %v1131_v37  ;;  %v88_v2 = vsel %vm86_vm14, %v76_v57, 2102212464  ;;  %v92_v45 = vsel %vm86_vm14, %v79_v61, 920167782  ;;  %v96_v7 = vsel %vm86_vm14, %v82_v42, 1326507024 }
  0xa1   :  { %v317_v4 = vadd.s32 %v316_v0, %v312_v50  ;;  %v89_v5 = vsel %vm85_vm13, %v73_v41, %v88_v2  ;;  %v93_v6 = vsel %vm85_vm13, %v76_v57, %v92_v45  ;;  %v97_v9 = vsel %vm85_vm13, %v79_v61, %v96_v7 }
  0xa2   :  { %v94_v8 = vsel %vm84_vm11, %v91_v63, %v93_v6  ;;  %vm371_vm15 = vcmp.gt.s32.totalorder %v1100_v53, 0  ;;  %v157_v10 = vand.u32 2139095040, %v1084_v30  ;;  %v98_v12 = vsel %vm84_vm11, %v95_v3, %v97_v9 }
  0xa3   :  { %v318_v11 = vadd.s32 536870912, %v317_v4  ;;  %v1154_v16 = vmul.u32.u64.low %v1095_v46, %v94_v8  ;;  %v1155_v18 = vmul.u32.u64.high %v1095_v46, %v94_v8, %v1154_v16  ;;  %v90_v19 = vsel %vm84_vm11, %v87_v62, %v89_v5 }
  0xa4   :  { %v1161_v20 = vmul.u32.u64.low %v1095_v46, %v98_v12  ;;  %v1162_v21 = vmul.u32.u64.high %v1095_v46, %v98_v12, %v1161_v20  ;;  %v372_v23 = vsel %vm371_vm15, %v1100_v53, 0  ;;  %v1168_v26 = vadd.s32 %v1130_v35, %v1127_v34 }
  0xa5   :  { %v1165_v24 = vshrl.u32 %v318_v11, 30  ;;  %v374_v25 = vand.u32 31, %v372_v23  ;;  %v1172_v28 = vshll.u32 %v368_v47, 8  ;;  %v158_v29 = vshrl.u32 %v157_v10, 23 }
  0xa6   :  { %v1176_v44 = vand.u32 8388607, %v154_v39  ;;  %v106_v32 = vmul.u32 %v1095_v46, %v90_v19  ;;  %v109_v53 = vadd.s32 1, %v1155_v18  ;;  %vm108_vm0 = vc.u32 %v1162_v21, %v1154_v16 }
  0xa7   :  { %v320_v31 = vshll.u32 %v1165_v24, 30  ;;  %v375_v33 = vsub.s32 32, %v374_v25  ;;  %v373_v34 = vshrl.u32 %v372_v23, 5  ;;  %v377_v36 = vshll.u32 %v1029_v49, %v374_v25 }
  0xa8   :  { %v380_v47 = vshll.u32 %v1030_v51, %v374_v25  ;;  %v110_v37 = vsel %vm108_vm0, %v109_v53, %v1155_v18  ;;  %v383_v41 = vshll.u32 %v1031_v54, %v374_v25  ;;  %v386_v50 = vshll.u32 %v1032_v56, %v374_v25 }
  0xa9   :  { %v1185_v35 = vsub.s32 %v317_v4, %v320_v31  ;;  %v378_v38 = vshrl.u32 %v1030_v51, %v375_v33  ;;  %v111_v46 = vadd.s32 %v110_v37, %v106_v32  ;;  %v381_v43 = vshrl.u32 %v1031_v54, %v375_v33 }
  0xaa   :  { %v384_v48 = vshrl.u32 %v1032_v56, %v375_v33  ;;  %v387_v55 = vshrl.u32 %v1033_v58, %v375_v33  ;;  %v389_v57 = vshll.u32 %v1033_v58, %v374_v25  ;;  %v390_v42 = vshrl.u32 %v1034_v1, %v375_v33 }
  0xab   :  { %v323_v40 = vsub.s32 0, %v1185_v35  ;;  %v379_v52 = vor.u32 %v378_v38, %v377_v36  ;;  %v112_v59 = vadd.s32 536870912, %v111_v46  ;;  %v382_v60 = vor.u32 %v381_v43, %v380_v47 }
  0xac   :  { %v385_v61 = vor.u32 %v384_v48, %v383_v41  ;;  %v376_v63 = vshrl.u32 %v1029_v49, %v375_v33  ;;  %v388_v0 = vor.u32 %v387_v55, %v386_v50  ;;  %v928_v2 = vadd.s32 4294967169, %v158_v29 }
  0xad   :  { %v933_v62 = vmin.u32 %v323_v40, %v1185_v35  ;;  %v113_v45 = vshrl.u32 %v112_v59, 30  ;;  %v391_v3 = vor.u32 %v390_v42, %v389_v57  ;;  %vm392_vm1 = vcmp.lt.s32.totalorder %v373_v34, 1 }
  0xae   :  { %vm395_vm2 = vcmp.lt.s32.totalorder %v373_v34, 4  ;;  %vm393_vm3 = vcmp.lt.s32.totalorder %v373_v34, 2  ;;  %v400_v6 = vsel %vm392_vm1, %v379_v52, %v382_v60  ;;  %vm394_vm4 = vcmp.lt.s32.totalorder %v373_v34, 3 }
  0xaf   :  { %v325_v4 = vclz %v933_v62  ;;  %v397_v5 = vsel %vm395_vm2, %v385_v61, 2102212464  ;;  %v114_v7 = vshll.u32 %v113_v45, 30  ;;  %v401_v8 = vsel %vm395_vm2, %v388_v0, 920167782 }
  0xb0   :  { %v404_v9 = vsel %vm392_vm1, %v382_v60, %v385_v61  ;;  %v396_v11 = vsel %vm392_vm1, %v376_v63, %v379_v52  ;;  %v402_v12 = vsel %vm394_vm4, %v385_v61, %v401_v8  ;;  %v405_v18 = vsel %vm395_vm2, %v391_v3, 1326507024 }
  0xb1   :  { %v934_v10 = vadd.s32 4294967294, %v325_v4  ;;  %v1199_v19 = vsub.s32 %v111_v46, %v114_v7  ;;  %v398_v20 = vsel %vm394_vm4, %v382_v60, %v397_v5  ;;  %v403_v23 = vsel %vm393_vm3, %v400_v6, %v402_v12 }
  0xb2   :  { %v406_v25 = vsel %vm394_vm4, %v388_v0, %v405_v18  ;;  %v1204_v31 = vmul.u32.u64.low %v1172_v28, %v403_v23  ;;  %v1205_v32 = vmul.u32.u64.high %v1172_v28, %v403_v23, %v1204_v31  ;;  %v399_v41 = vsel %vm393_vm3, %v396_v11, %v398_v20 }
  0xb3   :  { %vm935_vm5 = vcmp.lt.s32.totalorder %v934_v10, 0  ;;  %v407_v29 = vsel %vm393_vm3, %v404_v9, %v406_v25  ;;  %v117_v33 = vsub.s32 0, %v1199_v19  ;;  %v164_v46 = vadd.s32 1, %v928_v2 }
  0xb4   :  { %v328_v53 = vsel %vm935_vm5, 0, %v934_v10  ;;  %v1210_v36 = vmul.u32.u64.low %v1172_v28, %v407_v29  ;;  %v1211_v47 = vmul.u32.u64.high %v1172_v28, %v407_v29, %v1210_v36  ;;  %v162_v50 = vor.u32 8388608, %v1176_v44 }
  0xb5   :  { %v329_v37 = vsub.s32 32, %v328_v53  ;;  %v333_v38 = vsub.s32 4294967266, %v328_v53  ;;  %v330_v43 = vshll.u32 %v1185_v35, %v328_v53  ;;  %v925_v48 = vmin.u32 %v117_v33, %v1199_v19 }
  0xb6   :  { %v137_v40 = vsub.s32 4, %v113_v45  ;;  %v418_v57 = vadd.s32 1, %v1205_v32  ;;  %vm165_vm6 = vcmp.gt.s32.totalorder %v164_v46, 0  ;;  %v415_v60 = vmul.u32 %v1172_v28, %v399_v41 }
  0xb7   :  { %v331_v52 = vshrl.u32 %v1168_v26, %v329_v37  ;;  %v334_v55 = vadd.s32 127, %v333_v38  ;;  %v119_v59 = vclz %v925_v48  ;;  %vm417_vm7 = vc.u32 %v1211_v47, %v1204_v31 }
  0xb8   :  { %v166_v34 = vsel %vm165_vm6, %v164_v46, 0  ;;  %vm53_vm8 = vcmp.lt.s32.totalorder %v1070_v14, 0  ;;  %v419_v44 = vsel %vm417_vm7, %v418_v57, %v1205_v32  ;;  %vm259_vm9 = vcmp.lt.s32.totalorder %v1068_v13, 0 }
  0xb9   :  { %v332_v61 = vor.u32 %v331_v52, %v330_v43  ;;  %v335_v35 = vshll.u32 %v334_v55, 23  ;;  %v926_v26 = vadd.s32 4294967294, %v119_v59  ;;  %v420_v42 = vadd.s32 %v419_v44, %v415_v60 }
  0xba   :  { %v1225_v62 = vshrl.u32 %v166_v34, 5  ;;  %v168_v63 = vand.u32 31, %v166_v34  ;;  %v107_v28 = vadd.s32 %v1154_v16, %v1162_v21  ;;  %v1229_v2 = vshll.u32 %v162_v50, 8 }
  0xbb   :  { %v336_v0 = vor.u32 4788187, %v335_v35  ;;  %v1233_v3 = vsel %vm53_vm8, %v137_v40, %v113_v45  ;;  %vm1237_vm10 = vcmp.le.f32.partialorder %v257_v15, 0.7853982  ;;  %v339_v5 = vcvt.s32.f32 %v332_v61 }
  0xbc   :  { %vm927_vm11 = vcmp.lt.s32.totalorder %v926_v26, 0  ;;  %v421_v6 = vadd.s32 536870912, %v420_v42  ;;  %v169_v7 = vsub.s32 32, %v168_v63  ;;  %v171_v16 = vshll.u32 %v1029_v49, %v168_v63 }
  0xbd   :  { %v337_v8 = vand.u32 2147483647, %v336_v0  ;;  %v122_v9 = vsel %vm927_vm11, 0, %v926_v26  ;;  %v174_v21 = vshll.u32 %v1030_v51, %v168_v63  ;;  %v177_v12 = vshll.u32 %v1031_v54, %v168_v63 }
  0xbe   :  { %v123_v10 = vsub.s32 32, %v122_v9  ;;  %v127_v11 = vsub.s32 4294967266, %v122_v9  ;;  %v1243_v45 = vshrl.u32 %v421_v6, 30  ;;  %vm186_vm12 = vcmp.lt.s32.totalorder %v1225_v62, 1 }
  0xbf   :  { %v340_v15 = vmul.f32 %v339_v5, %v337_v8  ;;  %v124_v18 = vshll.u32 %v1199_v19, %v122_v9  ;;  %v172_v20 = vshrl.u32 %v1030_v51, %v169_v7  ;;  %v175_v23 = vshrl.u32 %v1031_v54, %v169_v7 }
  0xc0   :  { %v125_v25 = vshrl.u32 %v107_v28, %v123_v10  ;;  %v128_v29 = vadd.s32 127, %v127_v11  ;;  %v423_v32 = vshll.u32 %v1243_v45, 30  ;;  %v178_v53 = vshrl.u32 %v1032_v56, %v169_v7 }
  0xc1   :  { %v341_v33 = vxor.u32 2147483648, %v340_v15  ;;  %v173_v36 = vor.u32 %v172_v20, %v171_v16  ;;  %v176_v37 = vor.u32 %v175_v23, %v174_v21  ;;  %v180_v38 = vshll.u32 %v1032_v56, %v168_v63 }
  0xc2   :  { %v126_v41 = vor.u32 %v125_v25, %v124_v18  ;;  %v129_v46 = vshll.u32 %v128_v29, 23  ;;  %v424_v43 = vsub.s32 %v420_v42, %v423_v32  ;;  %v179_v48 = vor.u32 %v178_v53, %v177_v12 }
  0xc3   :  { %v342_v51 = vsel %vm259_vm9, %v341_v33, %v340_v15  ;;  %v181_v54 = vshrl.u32 %v1033_v58, %v169_v7  ;;  %v183_v19 = vshll.u32 %v1033_v58, %v168_v63  ;;  %v184_v50 = vshrl.u32 %v1034_v1, %v169_v7 }
  0xc4   :  { %vm1260_vm13 = vcmp.le.f32.partialorder %v51_v17, 0.7853982  ;;  %v130_v56 = vor.u32 4788187, %v129_v46  ;;  %v426_v52 = vsub.s32 0, %v424_v43  ;;  %v170_v55 = vshrl.u32 %v1029_v49, %v169_v7 }
  0xc5   :  { %vm187_vm14 = vcmp.lt.s32.totalorder %v1225_v62, 2  ;;  %v345_v57 = vsel %vm1237_vm10, %v1068_v13, %v342_v51  ;;  %v133_v59 = vcvt.s32.f32 %v126_v41  ;;  %v182_v58 = vor.u32 %v181_v54, %v180_v38 }
  0xc6   :  { %v185_v60 = vor.u32 %v184_v50, %v183_v19  ;;  %v131_v1 = vand.u32 2147483647, %v130_v56  ;;  %v937_v34 = vmin.u32 %v426_v52, %v424_v43  ;;  %vm188_vm15 = vcmp.lt.s32.totalorder %v1225_v62, 3 }
  0xc7   :  { %vm189_vm0 = vcmp.lt.s32.totalorder %v1225_v62, 4  ;;  %v190_v17 = vsel %vm186_vm12, %v170_v55, %v173_v36  ;;  %v194_v49 = vsel %vm186_vm12, %v173_v36, %v176_v37  ;;  %987 = vcosq.f32 %v345_v57 }
  0xc8   :  { %v191_v61 = vsel %vm189_vm0, %v179_v48, 2102212464  ;;  %v195_v35 = vsel %vm189_vm0, %v182_v58, 920167782  ;;  %v134_v44 = vmul.f32 %v133_v59, %v131_v1  ;;  %v428_v26 = vclz %v937_v34  ;;  %v1336_v34 = vpop.permute.xlu1 %887 }
  0xc9   :  { %v192_v42 = vsel %vm188_vm15, %v176_v37, %v191_v61  ;;  %v196_v63 = vsel %vm188_vm15, %v179_v48, %v195_v35  ;;  %v198_v28 = vsel %vm186_vm12, %v176_v37, %v179_v48  ;;  %v199_v5 = vsel %vm189_vm0, %v185_v60, 1326507024 }
  0xca   :  { %v197_v0 = vsel %vm187_vm14, %v194_v49, %v196_v63  ;;  %989 = vsinq.f32 %v345_v57  ;;  %v135_v6 = vxor.u32 2147483648, %v134_v44  ;;  %v938_v7 = vadd.s32 4294967294, %v428_v26  ;;  %v885_v57 = vpop.permute.xlu0 %884 }
  0xcb   :  { %v200_v8 = vsel %vm188_vm15, %v182_v58, %v199_v5  ;;  %v193_v9 = vsel %vm187_vm14, %v190_v17, %v192_v42  ;;  %v1290_v21 = vmul.u32.u64.low %v1229_v2, %v197_v0  ;;  %v1291_v10 = vmul.u32.u64.high %v1229_v2, %v197_v0, %v1290_v21 }
  0xcc   :  { %v201_v16 = vsel %vm187_vm14, %v198_v28, %v200_v8  ;;  %v136_v11 = vsel %vm53_vm8, %v135_v6, %v134_v44  ;;  %vm939_vm1 = vcmp.lt.s32.totalorder %v938_v7, 0  ;;  %v416_v62 = vadd.s32 %v1204_v31, %v1211_v47 }
  0xcd   :  { %v1297_v12 = vmul.u32.u64.low %v1229_v2, %v201_v16  ;;  %v1298_v15 = vmul.u32.u64.high %v1229_v2, %v201_v16, %v1297_v12  ;;  %v139_v18 = vsel %vm1260_vm13, %v1070_v14, %v136_v11  ;;  %v431_v20 = vsel %vm939_vm1, 0, %v938_v7 }
  0xce   :  { %v343_v23 = vsub.s32 4, %v1165_v24  ;;  %991 = vcosq.f32 %v139_v18  ;;  %v432_v25 = vsub.s32 32, %v431_v20  ;;  %v436_v29 = vsub.s32 4294967266, %v431_v20  ;;  %v891_v12 = vpop.permute.xlu1 %890 }
  0xcf   :  { %v140_v32 = vsel %vm1260_vm13, 0, %v1233_v3  ;;  %993 = vsinq.f32 %v139_v18  ;;  %v209_v53 = vmul.u32 %v1229_v2, %v193_v9  ;;  %v212_v33 = vadd.s32 1, %v1291_v10 }
  0xd0   :  { %v433_v36 = vshll.u32 %v424_v43, %v431_v20  ;;  %v434_v37 = vshrl.u32 %v416_v62, %v432_v25  ;;  %v437_v38 = vadd.s32 127, %v436_v29  ;;  %vm211_vm2 = vc.u32 %v1298_v15, %v1290_v21 }
  0xd1   :  { %v213_v31 = vsel %vm211_vm2, %v212_v33, %v1291_v10  ;;  %v556_v47 = vadd.s32 3, %v140_v32  ;;  %v344_v41 = vsel %vm259_vm9, %v343_v23, %v1165_v24  ;;  %v1319_v51 = vpop.eup %987  ;;  %v144_v43 = vand.u32 3, %v140_v32 }
  0xd2   :  { %v435_v46 = vor.u32 %v434_v37, %v433_v36  ;;  %v438_v3 = vshll.u32 %v437_v38, 23  ;;  %v214_v48 = vadd.s32 %v213_v31, %v209_v53  ;;  %v346_v2 = vsel %vm1237_vm10, 0, %v344_v41 }
  0xd3   :  { %vm362_vm3 = vcmp.lt.s32.totalorder %v1078_v22, 0  ;;  %v557_v40 = vand.u32 3, %v556_v47  ;;  %v350_v56 = vand.u32 3, %v346_v2  ;;  %vm1326_vm4 = vcmp.le.f32.partialorder %v360_v27, 0.7853982 }
  0xd4   :  { %v1321_v54 = vpop.eup %989  ;;  %v439_v19 = vor.u32 4788187, %v438_v3  ;;  %v215_v50 = vadd.s32 536870912, %v214_v48  ;;  %v442_v4 = vcvt.s32.f32 %v435_v46  ;;  %vm143_vm5 = vweird.f32 %v1070_v14 }
  0xd5   :  { %vm145_vm6 = vcmp.lt.s32.totalorder %v144_v43, 2  ;;  %vm895_vm7 = vcmp.eq.s32.totalorder %v885_v57, 1  ;;  %v353_v59 = vxor.u32 2147483648, %v1321_v54  ;;  %v356_v58 = vxor.u32 2147483648, %v1319_v51  ;;  %v894_v57 = vpop.permute.xlu0 %893 }
  0xd6   :  { %v440_v52 = vand.u32 2147483647, %v439_v19  ;;  %v1330_v55 = vshrl.u32 %v215_v50, 30  ;;  %vm146_vm8 = vcmp.eq.s32.totalorder %v144_v43, 0  ;;  %v764_v17 = vadd.s32 3, %v346_v2 }
  0xd7   :  { %vm149_vm9 = vcmp.eq.s32.totalorder %v144_v43, 2  ;;  %vm559_vm10 = vcmp.eq.s32.totalorder %v557_v40, 0  ;;  %vm352_vm11 = vcmp.eq.s32.totalorder %v350_v56, 0  ;;  %vm355_vm12 = vcmp.eq.s32.totalorder %v350_v56, 2 }
  0xd8   :  { %v992_v60 = vpop.eup %991  ;;  %v443_v1 = vmul.f32 %v442_v4, %v440_v52  ;;  %v217_v27 = vshll.u32 %v1330_v55, 30  ;;  %vm562_vm13 = vcmp.eq.s32.totalorder %v557_v40, 2  ;;  %v354_v42 = vsel %vm352_vm11, %v1319_v51, %v353_v59 }
  0xd9   :  { %v994_v61 = vpop.eup %993  ;;  %v150_v49 = vxor.u32 2147483648, %v992_v60  ;;  %v357_v63 = vsel %vm355_vm12, %v356_v58, %v1321_v54  ;;  %v446_v0 = vsub.s32 4, %v1243_v45  ;;  %v765_v7 = vand.u32 3, %v764_v17 }
  0xda   :  { %v444_v35 = vxor.u32 2147483648, %v443_v1  ;;  %v218_v44 = vsub.s32 %v214_v48, %v217_v27  ;;  %v147_v26 = vxor.u32 2147483648, %v994_v61  ;;  %vm558_vm14 = vcmp.lt.s32.totalorder %v557_v40, 2 }
  0xdb   :  { %v151_v6 = vsel %vm149_vm9, %v150_v49, %v994_v61  ;;  %v564_v10 = vsel %vm562_vm13, %v150_v49, %v994_v61  ;;  %vm351_vm15 = vcmp.lt.s32.totalorder %v350_v56, 2  ;;  %v447_v20 = vsel %vm362_vm3, %v446_v0, %v1243_v45 }
  0xdc   :  { %v445_v28 = vsel %vm362_vm3, %v444_v35, %v443_v1  ;;  %v220_v5 = vsub.s32 0, %v218_v44  ;;  %v148_v9 = vsel %vm146_vm8, %v992_v60, %v147_v26  ;;  %v561_v16 = vsel %vm559_vm10, %v992_v60, %v147_v26 }
  0xdd   :  { %v448_v8 = vsel %vm1326_vm4, %v1078_v22, %v445_v28  ;;  %v152_v18 = vsel %vm145_vm6, %v148_v9, %v151_v6  ;;  %v358_v62 = vsel %vm351_vm15, %v354_v42, %v357_v63  ;;  %v565_v29 = vsel %vm558_vm14, %v561_v16, %v564_v10 }
  0xde   :  { %995 = vcosq.f32 %v448_v8  ;;  %v929_v11 = vmin.u32 %v220_v5, %v218_v44  ;;  %v153_v25 = vsel %vm143_vm5, nan, %v152_v18  ;;  %vm767_vm0 = vcmp.eq.s32.totalorder %v765_v7, 0 }
  0xdf   :  { %997 = vsinq.f32 %v448_v8  ;;  %v566_v32 = vsel %vm143_vm5, nan, %v565_v29  ;;  %vm349_vm1 = vweird.f32 %v1068_v13  ;;  %v769_v53 = vsel %vm767_vm0, %v1319_v51, %v353_v59 }
  0xe0   :  { %v222_v23 = vclz %v929_v11  ;;  %vm897_vm2 = vcmp.eq.s32.totalorder %v891_v12, 1  ;;  %v899_v36 = vsel %vm895_vm7, %v153_v25, %v566_v32  ;;  %vm770_vm6 = vcmp.eq.s32.totalorder %v765_v7, 2 }
  0xe1   :  { %v449_v45 = vsel %vm1326_vm4, 0, %v447_v20  ;;  %903 = vst [vmem:[#allocation2] sm:$0xff] %v899_v36  ;;  %v359_v37 = vsel %vm349_vm1, nan, %v358_v62  ;;  %vm766_vm3 = vcmp.lt.s32.totalorder %v765_v7, 2  ;;  %v772_v38 = vsel %vm770_vm6, %v356_v58, %v1321_v54 }
  0xe2   :  { %v930_v33 = vadd.s32 4294967294, %v222_v23  ;;  %v868_v31 = vadd.s32 3, %v449_v45  ;;  %v773_v14 = vsel %vm766_vm3, %v769_v53, %v772_v38  ;;  %v453_v41 = vand.u32 3, %v449_v45 }
  0xe3   :  { %v774_v13 = vsel %vm349_vm1, nan, %v773_v14  ;;  %v210_v46 = vadd.s32 %v1290_v21, %v1298_v15  ;;  %vm452_vm12 = vweird.f32 %v1078_v22  ;;  %vm898_vm13 = vcmp.eq.s32.totalorder %v894_v57, 1 }
  0xe4   :  { %vm931_vm8 = vcmp.lt.s32.totalorder %v930_v33, 0  ;;  %v901_v2 = vsel %vm897_vm2, %v359_v37, %v774_v13  ;;  %v869_v51 = vand.u32 3, %v868_v31  ;;  %vm454_vm4 = vcmp.lt.s32.totalorder %v453_v41, 2 }
  0xe5   :  { %v225_v47 = vsel %vm931_vm8, 0, %v930_v33  ;;  %905 = vst [vmem:[#allocation2 + $0x10] sm:$0xff] %v901_v2  ;;  %vm458_vm5 = vcmp.eq.s32.totalorder %v453_v41, 2  ;;  %vm455_vm9 = vcmp.eq.s32.totalorder %v453_v41, 0  ;;  %v240_v42 = vsub.s32 4, %v1330_v55 }
  0xe6   :  { %v226_v3 = vsub.s32 32, %v225_v47  ;;  %v230_v48 = vsub.s32 4294967266, %v225_v47  ;;  %v227_v19 = vshll.u32 %v218_v44, %v225_v47  ;;  %vm874_vm7 = vcmp.eq.s32.totalorder %v869_v51, 2 }
  0xe7   :  { %vm871_vm10 = vcmp.eq.s32.totalorder %v869_v51, 0  ;;  %vm870_vm11 = vcmp.lt.s32.totalorder %v869_v51, 2  ;;  %vm156_vm14 = vcmp.lt.s32.totalorder %v1084_v30, 0  ;;  %vm155_vm15 = vcmp.le.f32.partialorder %v154_v39, 0.7853982 }
  0xe8   :  { %v996_v43 = vpop.eup %995  ;;  %v228_v50 = vshrl.u32 %v210_v46, %v226_v3  ;;  %v231_v40 = vadd.s32 127, %v230_v48  ;;  %v241_v0 = vsel %vm156_vm14, %v240_v42, %v1330_v55 }
  0xe9   :  { %v998_v54 = vpop.eup %997  ;;  %v459_v56 = vxor.u32 2147483648, %v996_v43  ;;  %v243_v5 = vsel %vm155_vm15, 0, %v241_v0 }
  0xea   :  { %v229_v24 = vor.u32 %v228_v50, %v227_v19  ;;  %v232_v52 = vshll.u32 %v231_v40, 23  ;;  %v456_v4 = vxor.u32 2147483648, %v998_v54  ;;  %v660_v6 = vadd.s32 3, %v243_v5 }
  0xeb   :  { %v460_v21 = vsel %vm458_vm5, %v459_v56, %v998_v54  ;;  %v876_v15 = vsel %vm874_vm7, %v459_v56, %v998_v54  ;;  %v247_v7 = vand.u32 3, %v243_v5  ;;  %vm896_vm5 = vcmp.eq.s32.totalorder %v1336_v34, 1 }
  0xec   :  { %v233_v59 = vor.u32 4788187, %v232_v52  ;;  %v457_v58 = vsel %vm455_vm9, %v996_v43, %v456_v4  ;;  %v873_v60 = vsel %vm871_vm10, %v996_v43, %v456_v4  ;;  %v236_v61 = vcvt.s32.f32 %v229_v24 }
  0xed   :  { %v461_v1 = vsel %vm454_vm4, %v457_v58, %v460_v21  ;;  %v877_v27 = vsel %vm870_vm11, %v873_v60, %v876_v15  ;;  %v661_v8 = vand.u32 3, %v660_v6  ;;  %vm252_vm0 = vcmp.eq.s32.totalorder %v247_v7, 2 }
  0xee   :  { %v234_v17 = vand.u32 2147483647, %v233_v59  ;;  %v462_v49 = vsel %vm452_vm12, nan, %v461_v1  ;;  %v878_v35 = vsel %vm452_vm12, nan, %v877_v27  ;;  %vm249_vm2 = vcmp.eq.s32.totalorder %v247_v7, 0 }
  0xef   :  { %v902_v44 = vsel %vm898_vm13, %v462_v49, %v878_v35  ;;  %vm666_vm1 = vcmp.eq.s32.totalorder %v661_v8, 2  ;;  %vm663_vm6 = vcmp.eq.s32.totalorder %v661_v8, 0  ;;  %vm248_vm3 = vcmp.lt.s32.totalorder %v247_v7, 2 }
  0xf0   :  { %v237_v26 = vmul.f32 %v236_v61, %v234_v17  ;;  %906 = vst [vmem:[#allocation2 + $0x18] sm:$0xf] %v902_v44  ;;  %vm662_vm8 = vcmp.lt.s32.totalorder %v661_v8, 2  ;;  %vm246_vm4 = vweird.f32 %v1084_v30 }
  0xf2   :  { %v238_v63 = vxor.u32 2147483648, %v237_v26 }
  0xf4   :  { %v239_v22 = vsel %vm156_vm14, %v238_v63, %v237_v26 }
  0xf5   :  { %v242_v28 = vsel %vm155_vm15, %v1084_v30, %v239_v22 }
  0xf6   :  { %999 = vcosq.f32 %v242_v28 }
  0xf7   :  { %1001 = vsinq.f32 %v242_v28 }
 0x100   :  { %v1000_v9 = vpop.eup %999 }
 0x101   :  { %v1002_v16 = vpop.eup %1001  ;;  %v253_v10 = vxor.u32 2147483648, %v1000_v9 }
 0x102   :  { %v250_v11 = vxor.u32 2147483648, %v1002_v16 }
 0x103   :  { %v254_v39 = vsel %vm252_vm0, %v253_v10, %v1002_v16  ;;  %v668_v55 = vsel %vm666_vm1, %v253_v10, %v1002_v16 }
 0x104   :  { %v251_v12 = vsel %vm249_vm2, %v1000_v9, %v250_v11  ;;  %v665_v18 = vsel %vm663_vm6, %v1000_v9, %v250_v11 }
 0x105   :  { %v255_v62 = vsel %vm248_vm3, %v251_v12, %v254_v39  ;;  %v669_v20 = vsel %vm662_vm8, %v665_v18, %v668_v55 }
 0x106   :  { %v256_v23 = vsel %vm246_vm4, nan, %v255_v62  ;;  %v670_v25 = vsel %vm246_vm4, nan, %v669_v20 }
 0x107   :  { %v900_v29 = vsel %vm896_vm5, %v256_v23, %v670_v25 }
 0x108   :  { %904 = vst [vmem:[#allocation2 + $0x8] sm:$0xff] %v900_v29 }
 0x109   :  { %1014 = shalt.err (!%p1011_p4)
}
 0x10a   :  { %s1015_s22 = scalar_lea.hbm %s1389_s2, 512 }
 0x10b   :  { %p1016_p5 = scmp.ne.s32.totalorder %s1389_s2, %s1015_s22  ;;  %p1019_p6 = scmp.lt.u32.totalorder %s1015_s22, %s1389_s2 }
 0x10d   :  { %p1021_p7 = pnand %p1019_p6, %p1016_p5 }
 0x10f   :  { %1024 = shalt.err (!%p1021_p7)
}
 0x110   :  { %s1036_s27 = smov 128   ;;  %s1037_s28 = smov 8  }
 0x111   :  { %918 = dma.vmem_to_hbm [thread:$0]  %s913_s1, 512, %s1389_s2, [#allocation3], %s1036_s27, %s1036_s27, %s1037_s28  }
 0x112   :  { %1025 = dma.done.wait [#allocation3], 512  }
 0x113   :  { %1026 = vsyncadd [#allocation3], 4294966784 }
 0x114   :  { %922 = vsyncpa [#allocation3], 1 }

</bundles_post_ra>
